<compile_context>
chip_gen: v7x
topology: tpu7x:2x2x1
jax: 0.10.0
libtpu: 0.0.40
codegen_flags: <defaults>
</compile_context>

<pallas_src>
import math

import jax
import jax.numpy as jnp
from jax.experimental import pallas as pl
from jax.experimental.pallas import tpu as pltpu


# ----------------------------- kernels --------------------------------------

def ffn_fused_kernel(x_ref, w1_ref, b1_ref, w2_ref, b2_ref, o_ref):
    """Resident-weight path: w1/w2 stay in VMEM across the whole grid."""
    # Fused bias + ReLU + cast: the (tm, d_ff) intermediate is materialized
    # once, already in the compute dtype (bf16 by default).
    h = jnp.maximum(
        jnp.dot(x_ref[...], w1_ref[...], preferred_element_type=jnp.float32)
        + b1_ref[...], 0.0).astype(w2_ref.dtype)
    o_ref[...] = (
        jnp.dot(h, w2_ref[...], preferred_element_type=jnp.float32)
        + b2_ref[...]).astype(o_ref.dtype)


def ffn_reduce_kernel(x_ref, w1_ref, b1_ref, w2_ref, b2_ref, o_ref, acc_ref):
    """d_ff-tiled path (weights too large for VMEM): reduce over d_ff slabs
    into an f32 VMEM accumulator."""
    k = pl.program_id(1)

    @pl.when(k == 0)
    def _init():
        acc_ref[...] = jnp.zeros_like(acc_ref)

    h = jnp.maximum(
        jnp.dot(x_ref[...], w1_ref[...], preferred_element_type=jnp.float32)
        + b1_ref[...], 0.0).astype(w2_ref.dtype)
    acc_ref[...] += jnp.dot(h, w2_ref[...], preferred_element_type=jnp.float32)

    @pl.when(k == pl.num_programs(1) - 1)
    def _finalize():
        # b2 added once, outside the reduction loop.
        o_ref[...] = (acc_ref[...] + b2_ref[...]).astype(o_ref.dtype)


# ----------------------------- helpers ---------------------------------------

def _round_up(x, m):
    return ((x + m - 1) // m) * m


def _round_down(x, m):
    return max(m, (x // m) * m)


def _tpu_defaults():
    """Per-generation tile / VMEM defaults."""
    try:
        kind = jax.devices()[0].device_kind.lower()
    except Exception:  # pragma: no cover - defensive
        kind = ""
    if "v7" in kind:
        # v7x: 64 MiB VMEM per TC, 2 TCs -> prefer resident weights, keep the
        # request <= ~52 MiB, and guarantee >= 2 row tiles for megacore.
        return dict(tm=1024, tk_ff=512, align=256,
                    vmem=52 * 2**20, min_row_tiles=2)
    if "v6" in kind:
        # v6e: 2x256x256 MXU, ~1.35 TB/s HBM -> roofline crossover tm ~ 680.
        return dict(tm=1024, tk_ff=512, align=256,
                    vmem=96 * 2**20, min_row_tiles=1)
    if "v5" in kind:
        # v5e: 4x128x128 MXU, 0.82 TB/s HBM -> crossover tm ~ 240; scoped VMEM
        # default is only 16 MiB so the explicit limit matters.
        return dict(tm=512, tk_ff=512, align=128,
                    vmem=48 * 2**20, min_row_tiles=1)
    # Unknown generation: conservative.
    return dict(tm=512, tk_ff=512, align=128,
                vmem=48 * 2**20, min_row_tiles=1)


def _resident_vmem_bytes(tm, d_model, d_ff, cdt_size, out_size):
    """Conservative VMEM estimate for the resident-weight fused kernel."""
    weights = 2 * d_model * d_ff * cdt_size           # w1 + w2 (single-buffered)
    biases = (d_ff + d_model) * 4
    x_io = 2 * tm * d_model * (cdt_size + out_size)   # double-buffered x / out
    h_tmp = tm * d_ff * (4 + cdt_size)                # f32 MXU result + cast
    return weights + biases + x_io + h_tmp


def _tiled_vmem_bytes(tm, tk_ff, d_model, cdt_size, out_size):
    """Conservative VMEM estimate for the d_ff-tiled reduction kernel."""
    weights = 2 * (2 * d_model * tk_ff * cdt_size)    # w1/w2 slabs, double-buffered
    biases = 2 * (tk_ff + d_model) * 4
    x_io = 2 * tm * d_model * (cdt_size + out_size)
    acc = tm * d_model * 4
    h_tmp = tm * tk_ff * (4 + cdt_size)
    return weights + biases + x_io + acc + h_tmp


def cast_ffn_params(w1, b1, w2, b2, compute_dtype=jnp.bfloat16):
    """Cast weights once, outside the per-call path (biases stay f32)."""
    return (w1.astype(compute_dtype), b1.astype(jnp.float32),
            w2.astype(compute_dtype), b2.astype(jnp.float32))


# ----------------------------- wrapper ---------------------------------------

def positionwise_feed_forward(x, w1, b1, w2, b2, *,
                              compute_dtype=jnp.bfloat16,
                              tm=None, tk_ff=None,
                              vmem_limit_bytes=None,
                              weights_resident=None):
    """x: [B, S, d_model]; w1: [d_model, d_ff] (= PyTorch w_1.weight.T);
       b1: [d_ff]; w2: [d_ff, d_model] (= w_2.weight.T); b2: [d_model].
       Returns [B, S, d_model] in x.dtype.

       For best throughput pass weights already cast with cast_ffn_params()
       (the wrapper skips any astype whose dtype already matches)."""
    B, S, d_model = x.shape
    d_ff = w1.shape[1]
    rows = B * S
    out_dtype = x.dtype

    defaults = _tpu_defaults()
    tm = defaults["tm"] if tm is None else tm
    tk_ff = defaults["tk_ff"] if tk_ff is None else tk_ff
    vmem_limit_bytes = defaults["vmem"] if vmem_limit_bytes is None else vmem_limit_bytes
    align = defaults["align"]
    min_row_tiles = defaults["min_row_tiles"]

    cdt = x.dtype if compute_dtype is None else jnp.dtype(compute_dtype)
    cs = jnp.dtype(cdt).itemsize
    osz = jnp.dtype(out_dtype).itemsize

    # ---- row tile selection --------------------------------------------------
    rows_aligned = _round_up(rows, 8)
    tm = max(8, min(tm, rows_aligned))
    tm = _round_down(tm, 8)
    if min_row_tiles > 1 and rows_aligned > min_row_tiles * 8:
        # Keep >= min_row_tiles row tiles so both v7x TensorCores get work.
        tm = min(tm, _round_up((rows_aligned + min_row_tiles - 1) // min_row_tiles, 8))

    budget = int(0.9 * vmem_limit_bytes)

    # ---- residency decision --------------------------------------------------
    if weights_resident is None:
        tm_res = tm
        while (_resident_vmem_bytes(tm_res, d_model, d_ff, cs, osz) > budget
               and tm_res > 256):
            tm_res = _round_down(tm_res // 2, 8)
        resident = _resident_vmem_bytes(tm_res, d_model, d_ff, cs, osz) <= budget
        if resident:
            tm = tm_res
    else:
        resident = bool(weights_resident)

    # ---- d_ff tiling (only used when weights are not resident) ---------------
    if resident:
        tk = d_ff
        d_ff_p = d_ff
        nk = 1
    else:
        tk = min(tk_ff, d_ff)
        if tk < d_ff:
            tk = _round_down(tk, align)
        # Shrink tiles until the double-buffered working set fits the budget.
        while _tiled_vmem_bytes(tm, tk, d_model, cs, osz) > budget:
            if tm > 256:
                tm = _round_down(tm // 2, 8)
            elif tk > align:
                tk = _round_down(tk // 2, align)
            else:
                break
        if tk >= d_ff:
            tk, d_ff_p = d_ff, d_ff
        else:
            d_ff_p = _round_up(d_ff, tk)
        nk = d_ff_p // tk

    rows_p = _round_up(rows, tm)
    n_row_tiles = rows_p // tm

    # ---- operand preparation (casts / pads only when actually needed) --------
    x2d = x.reshape(rows, d_model)
    if x2d.dtype != cdt:
        x2d = x2d.astype(cdt)
    if rows_p != rows:
        x2d = jnp.pad(x2d, ((0, rows_p - rows), (0, 0)))

    w1c = w1 if w1.dtype == cdt else w1.astype(cdt)
    w2c = w2 if w2.dtype == cdt else w2.astype(cdt)
    b1_2d = b1.reshape(1, d_ff).astype(jnp.float32)
    b2_2d = b2.reshape(1, d_model).astype(jnp.float32)

    if d_ff_p != d_ff:
        # Zero-pad d_ff: exact (relu(0+0)=0; zero w2 rows contribute nothing).
        w1c = jnp.pad(w1c, ((0, 0), (0, d_ff_p - d_ff)))
        b1_2d = jnp.pad(b1_2d, ((0, 0), (0, d_ff_p - d_ff)))
        w2c = jnp.pad(w2c, ((0, d_ff_p - d_ff), (0, 0)))

    # ---- cost estimate --------------------------------------------------------
    flops = 4 * rows * d_model * d_ff
    weight_bytes = 2 * d_model * d_ff_p * cs
    weight_traffic = weight_bytes * (1 if resident else n_row_tiles)
    bytes_accessed = (rows_p * d_model * (cs + osz) + weight_traffic
                      + (d_ff_p + d_model) * 4)
    cost = pl.CostEstimate(flops=int(flops), transcendentals=0,
                           bytes_accessed=int(bytes_accessed))

    # ---- pallas_call -----------------------------------------------------------
    if resident:
        out2d = pl.pallas_call(
            ffn_fused_kernel,
            out_shape=jax.ShapeDtypeStruct((rows_p, d_model), out_dtype),
            grid=(n_row_tiles,),
            in_specs=[
                pl.BlockSpec((tm, d_model), lambda i: (i, 0)),       # x row tile
                pl.BlockSpec((d_model, d_ff_p), lambda i: (0, 0)),   # w1 (resident)
                pl.BlockSpec((1, d_ff_p), lambda i: (0, 0)),         # b1 (resident)
                pl.BlockSpec((d_ff_p, d_model), lambda i: (0, 0)),   # w2 (resident)
                pl.BlockSpec((1, d_model), lambda i: (0, 0)),        # b2 (resident)
            ],
            out_specs=pl.BlockSpec((tm, d_model), lambda i: (i, 0)),
            compiler_params=pltpu.CompilerParams(
                dimension_semantics=("parallel",),
                vmem_limit_bytes=vmem_limit_bytes,
            ),
            cost_estimate=cost,
        )(x2d, w1c, b1_2d, w2c, b2_2d)
    else:
        out2d = pl.pallas_call(
            ffn_reduce_kernel,
            out_shape=jax.ShapeDtypeStruct((rows_p, d_model), out_dtype),
            grid=(n_row_tiles, nk),
            in_specs=[
                pl.BlockSpec((tm, d_model), lambda i, k: (i, 0)),    # x row tile
                pl.BlockSpec((d_model, tk), lambda i, k: (0, k)),    # w1 slab
                pl.BlockSpec((1, tk), lambda i, k: (0, k)),          # b1 chunk
                pl.BlockSpec((tk, d_model), lambda i, k: (k, 0)),    # w2 slab
                pl.BlockSpec((1, d_model), lambda i, k: (0, 0)),     # b2 (invariant)
            ],
            out_specs=pl.BlockSpec((tm, d_model), lambda i, k: (i, 0)),
            scratch_shapes=[pltpu.VMEM((tm, d_model), jnp.float32)],
            compiler_params=pltpu.CompilerParams(
                dimension_semantics=("parallel", "arbitrary"),
                vmem_limit_bytes=vmem_limit_bytes,
            ),
            cost_estimate=cost,
        )(x2d, w1c, b1_2d, w2c, b2_2d)

    if rows_p != rows:
        out2d = out2d[:rows]
    return out2d.reshape(B, S, d_model)


# ----------------------------- reference & demo ------------------------------

def reference(x, w1, b1, w2, b2):
    h = jnp.maximum(jnp.einsum("bsd,df->bsf", x, w1) + b1, 0.0)
    return jnp.einsum("bsf,fd->bsd", h, w2) + b2


if __name__ == "__main__":
    key = jax.random.PRNGKey(0)

    def make_params(k, d_model, d_ff):
        k1, kb1, k2, kb2 = jax.random.split(k, 4)
        lim1 = 1.0 / math.sqrt(d_model)
        lim2 = 1.0 / math.sqrt(d_ff)
        # Stored as (in_features, out_features) == PyTorch weight.T
        w1 = jax.random.uniform(k1, (d_model, d_ff), jnp.float32, -lim1, lim1)
        b1 = jax.random.uniform(kb1, (d_ff,), jnp.float32, -lim1, lim1)
        w2 = jax.random.uniform(k2, (d_ff, d_model), jnp.float32, -lim2, lim2)
        b2 = jax.random.uniform(kb2, (d_model,), jnp.float32, -lim2, lim2)
        return w1, b1, w2, b2

    kx1, kp1, kx2, kp2, kx3, kp3 = jax.random.split(key, 6)

    # --- Test 1: module-consistent small shapes, exact f32 path --------------
    B, S, d_model, d_ff = 2, 8, 32, 64
    x = jax.random.normal(kx1, (B, S, d_model), dtype=jnp.float32)
    p = make_params(kp1, d_model, d_ff)
    out = jax.block_until_ready(
        positionwise_feed_forward(x, *p, compute_dtype=jnp.float32))
    ref = reference(x, *p)
    assert out.shape == (B, S, d_model)
    assert jnp.allclose(out, ref, atol=1e-5, rtol=1e-5), "f32 mismatch (small)"

    # --- Test 2: bf16 default, row padding + forced d_ff-tiled path with
    #             d_ff zero-padding (384 -> multiple of 256) ------------------
    B2, S2, dm2, dff2 = 2, 60, 128, 384          # rows=120 -> padded to 128
    x2 = jax.random.normal(kx2, (B2, S2, dm2), dtype=jnp.float32)
    p2 = make_params(kp2, dm2, dff2)
    out2 = jax.block_until_ready(
        positionwise_feed_forward(x2, *p2, tm=64, tk_ff=256,
                                  weights_resident=False))
    ref2 = reference(x2, *p2)
    assert jnp.allclose(out2.astype(jnp.float32), ref2,
                        atol=5e-2, rtol=5e-2), "bf16 mismatch (tiled+padded)"

    # --- Test 3: bf16 default, auto resident-weight fast path, weights
    #             pre-cast once by the caller ---------------------------------
    B3, S3, dm3, dff3 = 4, 64, 256, 1024
    x3 = jax.random.normal(kx3, (B3, S3, dm3), dtype=jnp.float32)
    p3 = make_params(kp3, dm3, dff3)
    p3_bf16 = cast_ffn_params(*p3, compute_dtype=jnp.bfloat16)
    out3 = jax.block_until_ready(positionwise_feed_forward(x3, *p3_bf16))
    ref3 = reference(x3, *p3)
    assert jnp.allclose(out3.astype(jnp.float32), ref3,
                        atol=5e-2, rtol=5e-2), "bf16 mismatch (resident)"

    print("KERNEL_OK")
</pallas_src>

<mosaic_0001>
module attributes {stable_mosaic.version = 11 : i64} {
  func.func @ffn_fused_kernel(%arg0: i32, %arg1: memref<16x32xf32, #tpu.memory_space<vmem>>, %arg2: memref<32x64xf32, #tpu.memory_space<vmem>>, %arg3: memref<1x64xf32, #tpu.memory_space<vmem>>, %arg4: memref<64x32xf32, #tpu.memory_space<vmem>>, %arg5: memref<1x32xf32, #tpu.memory_space<vmem>>, %arg6: memref<16x32xf32, #tpu.memory_space<vmem>>) attributes {dimension_semantics = [#tpu.dimension_semantics<parallel>], iteration_bounds = array<i64: 1>, scalar_prefetch = 0 : i64, scratch_operands = 0 : i64, tpu.core_type = #tpu.core_type<tc>, window_params = [{transform_indices = @transform_0, window_bounds = array<i64: 16, 32>}, {pipeline_mode = #tpu.pipeline_mode<synchronous>, transform_indices = @transform_1, window_bounds = array<i64: 32, 64>}, {pipeline_mode = #tpu.pipeline_mode<synchronous>, transform_indices = @transform_2, window_bounds = array<i64: 1, 64>}, {pipeline_mode = #tpu.pipeline_mode<synchronous>, transform_indices = @transform_3, window_bounds = array<i64: 64, 32>}, {pipeline_mode = #tpu.pipeline_mode<synchronous>, transform_indices = @transform_4, window_bounds = array<i64: 1, 32>}, {transform_indices = @transform_5, window_bounds = array<i64: 16, 32>}]} {
    %c0 = arith.constant 0 : index
    %c0_0 = arith.constant 0 : index
    %0 = vector.load %arg1[%c0, %c0_0] : memref<16x32xf32, #tpu.memory_space<vmem>>, vector<16x32xf32>
    %c0_1 = arith.constant 0 : index
    %c0_2 = arith.constant 0 : index
    %1 = vector.load %arg2[%c0_1, %c0_2] : memref<32x64xf32, #tpu.memory_space<vmem>>, vector<32x64xf32>
    %cst = arith.constant dense<0.000000e+00> : vector<16x64xf32>
    %2 = tpu.matmul %0, %1, %cst {dimension_numbers = #tpu.dot_dimension_numbers<[1], [0], [0], [1], [0, 0, 1, 1], [], []>} : vector<16x32xf32>, vector<32x64xf32>, vector<16x64xf32> -> vector<16x64xf32>
    %c0_3 = arith.constant 0 : index
    %c0_4 = arith.constant 0 : index
    %3 = vector.load %arg3[%c0_3, %c0_4] : memref<1x64xf32, #tpu.memory_space<vmem>>, vector<1x64xf32>
    %4 = vector.broadcast %3 : vector<1x64xf32> to vector<16x64xf32>
    %5 = arith.addf %2, %4 : vector<16x64xf32>
    %cst_5 = arith.constant 0.000000e+00 : f32
    %6 = vector.broadcast %cst_5 : f32 to vector<16x64xf32>
    %7 = arith.maximumf %5, %6 : vector<16x64xf32>
    %c0_6 = arith.constant 0 : index
    %c0_7 = arith.constant 0 : index
    %8 = vector.load %arg4[%c0_6, %c0_7] : memref<64x32xf32, #tpu.memory_space<vmem>>, vector<64x32xf32>
    %cst_8 = arith.constant dense<0.000000e+00> : vector<16x32xf32>
    %9 = tpu.matmul %7, %8, %cst_8 {dimension_numbers = #tpu.dot_dimension_numbers<[1], [0], [0], [1], [0, 0, 1, 1], [], []>} : vector<16x64xf32>, vector<64x32xf32>, vector<16x32xf32> -> vector<16x32xf32>
    %c0_9 = arith.constant 0 : index
    %c0_10 = arith.constant 0 : index
    %10 = vector.load %arg5[%c0_9, %c0_10] : memref<1x32xf32, #tpu.memory_space<vmem>>, vector<1x32xf32>
    %11 = vector.broadcast %10 : vector<1x32xf32> to vector<16x32xf32>
    %12 = arith.addf %9, %11 : vector<16x32xf32>
    %c0_11 = arith.constant 0 : index
    %c0_12 = arith.constant 0 : index
    %13 = vector.load %arg6[%c0_11, %c0_12] : memref<16x32xf32, #tpu.memory_space<vmem>>, vector<16x32xf32>
    tpu.vector_store %arg6[%c0_11, %c0_12], %12 {strides = array<i32>} : memref<16x32xf32, #tpu.memory_space<vmem>>, vector<16x32xf32>,
    return
  }
  func.func @transform_0(%arg0: i32) -> (i32, i32) {
    %c0_i32 = arith.constant 0 : i32
    %c0_i32_0 = arith.constant 0 : i32
    return %arg0, %c0_i32 : i32, i32
  }
  func.func @transform_1(%arg0: i32) -> (i32, i32) {
    %c0_i32 = arith.constant 0 : i32
    %c0_i32_0 = arith.constant 0 : i32
    %c0_i32_1 = arith.constant 0 : i32
    return %c0_i32, %c0_i32_0 : i32, i32
  }
  func.func @transform_2(%arg0: i32) -> (i32, i32) {
    %c0_i32 = arith.constant 0 : i32
    %c0_i32_0 = arith.constant 0 : i32
    %c0_i32_1 = arith.constant 0 : i32
    return %c0_i32, %c0_i32_0 : i32, i32
  }
  func.func @transform_3(%arg0: i32) -> (i32, i32) {
    %c0_i32 = arith.constant 0 : i32
    %c0_i32_0 = arith.constant 0 : i32
    %c0_i32_1 = arith.constant 0 : i32
    return %c0_i32, %c0_i32_0 : i32, i32
  }
  func.func @transform_4(%arg0: i32) -> (i32, i32) {
    %c0_i32 = arith.constant 0 : i32
    %c0_i32_0 = arith.constant 0 : i32
    %c0_i32_1 = arith.constant 0 : i32
    return %c0_i32, %c0_i32_0 : i32, i32
  }
  func.func @transform_5(%arg0: i32) -> (i32, i32) {
    %c0_i32 = arith.constant 0 : i32
    %c0_i32_0 = arith.constant 0 : i32
    return %arg0, %c0_i32 : i32, i32
  }
}

</mosaic_0001>

<bundles_post_ra>
// kernel: tpu_custom_call.1
= control target key start
LH: loop header
LB: loop body
LE: loop exit
PB: predicated region body
PF: predicated region fallthrough
CT: control target
= control target key end

     0   :  { %vm34_vm0 = vcmask 261120   ;;  %s433_s0 = inlined_call_operand.vmem [shape: f32[16,32], index: 0, kind: input, shape index: {}]   ;;  %s434_s1 = inlined_call_operand.vmem [shape: f32[32,64], index: 1, kind: input, shape index: {}]   ;;  %s435_s2 = inlined_call_operand.vmem [shape: f32[1,64], index: 2, kind: input, shape index: {}]   ;;  %s436_s3 = inlined_call_operand.vmem [shape: f32[64,32], index: 3, kind: input, shape index: {}]   ;;  %s437_s4 = inlined_call_operand.vmem [shape: f32[1,32], index: 4, kind: input, shape index: {}]   ;;  %s438_s5 = inlined_call_operand.hbm [shape: f32[16,32], index: 5, kind: output, shape index: {}]  }
   0x1   :  { %v23_v0 = vld [vmem:[%s434_s1] sm:$0xff]  ;;  %v24_v1 = vld [vmem:[%s434_s1 + $0x8] sm:$0xff]  ;;  %v25_v2 = vld [vmem:[%s434_s1 + $0x10] sm:$0xff] }
   0x2   :  { %v285_v3 = vpack.c.bf16 %v24_v1, %v23_v0  ;;  %v26_v4 = vld [vmem:[%s434_s1 + $0x18] sm:$0xff]  ;;  %v21_v5 = vld [vmem:[%s433_s0] sm:$0xff]  ;;  %v119_v8 = vld [vmem:[%s436_s3 + $0x8] sm:$0xff] }
   0x3   :  { %v289_v6 = vpack.c.bf16 %v26_v4, %v25_v2  ;;  %263 = vmatprep.mubr.msk.f32.mxu0 %vm34_vm0, %v21_v5  ;;  %v118_v7 = vld [vmem:[%s436_s3] sm:$0xff]  ;;  %v120_v9 = vld [vmem:[%s436_s3 + $0x10] sm:$0xff]  ;;  %v121_v11 = vld [vmem:[%s436_s3 + $0x18] sm:$0xff] }
   0x4   :  { %286 = vmatprep.subr.bf16.mxu0 %v285_v3  ;;  %v293_v10 = vpack.c.bf16 %v119_v8, %v118_v7  ;;  %v297_v12 = vpack.c.bf16 %v121_v11, %v120_v9  ;;  %v122_v13 = vld [vmem:[%s436_s3 + $0x20] sm:$0xff]  ;;  %v123_v14 = vld [vmem:[%s436_s3 + $0x28] sm:$0xff] }
   0x5   :  { %288 = vmatpush3.bf16.msra.mxu0 %v285_v3 }
   0x6   :  { %10 = vsyncpa [#allocation3], 0  ;;  %290 = vmatprep.subr.bf16.mxu0 %v289_v6  ;;  %294 = vmatprep.subr.bf16.mxu1 %v293_v10  ;;  %v301_v15 = vpack.c.bf16 %v123_v14, %v122_v13  ;;  %v22_v16 = vld [vmem:[%s433_s0 + $0x8] sm:$0xff]  ;;  %v124_v17 = vld [vmem:[%s436_s3 + $0x30] sm:$0xff]  ;;  %vm133_vm1 = vcmask 523264  }
   0x7   :  { %296 = vmatpush3.bf16.msra.mxu1 %v293_v10  ;;  %v125_v18 = vld [vmem:[%s436_s3 + $0x38] sm:$0xff]  ;;  %v233_v20 = vld [vmem:[%s435_s2] ss:$0 sm:$0xff]  ;;  %s336_s3 = smov [#allocation2]  }
   0x8   :  { %298 = vmatprep.subr.bf16.mxu1 %v297_v12  ;;  %v305_v19 = vpack.c.bf16 %v125_v18, %v124_v17  ;;  %v236_v27 = vld [vmem:[%s437_s4] ss:$0 sm:$0xff]  ;;  %s222_s23 = sshll.u32 %s336_s3, 4  ;;  %s223_s23 = int_to_ptr.vmem [resolvable:$true] %s222_s23 }
   0x9   :  { %292 = vmatpush3.bf16.msra.mxu0 %v289_v6  ;;  %s312_s2 = scalar_lea.vmem %s223_s23, 256  ;;  %p317_p1 = scmp.lt.s32.totalorder %s223_s23, %s223_s23 }
   0xa   :  { %p313_p0 = scmp.ne.s32.totalorder %s223_s23, %s312_s2  ;;  %p318_p2 = scmp.lt.s32.totalorder %s312_s2, %s312_s2 }
   0xb   :  { %300 = vmatpush3.bf16.msra.mxu1 %v297_v12 }
   0xc   :  { %264 = vmatmul.mubr.msk.f32.vlgmr.msra.gmra.mrb[0].mxu0 %vm34_vm0, %v22_v16  ;;  %302 = vmatprep.subr.bf16.mxu1 %v301_v15  ;;  %p319_p3 = por %p318_p2, %p317_p1 }
   0xe   :  { %p320_p4 = pnand %p319_p3, %p313_p0 }
   0xf   :  { %304 = vmatpush3.bf16.msra.mxu1 %v301_v15 }
  0x10   :  { %306 = vmatprep.subr.bf16.mxu1 %v305_v19 }
  0x13   :  { %308 = vmatpush3.bf16.msra.mxu1 %v305_v19 }
  0xdf   :  { %v265_v21 = vpop.f32.mrb[0].mxu0 }
  0xe0   :  { %v113_v22 = vadd.f32 %v265_v21, %v233_v20  ;;  %v107_v23 = vpop.f32.mrb[1].mxu0 }
  0xe1   :  { %v108_v24 = vadd.f32 %v233_v20, %v107_v23 }
  0xe2   :  { %v117_v26 = vmax.f32 %v113_v22, 0.0 }
  0xe3   :  { %v116_v25 = vmax.f32 %v108_v24, 0.0 }
  0xe5   :  { %282 = vmatprep.mubr.msk.f32.mxu1 %vm133_vm1, %v116_v25 }
  0xe6   :  { %283 = vmatmul.mubr.msk.f32.vlgmr.msra.gmra.mrb[0].mxu1 %vm133_vm1, %v117_v26 }
 0x1b9   :  { %v284_v28 = vpop.f32.mrb[0].mxu1 }
 0x1ba   :  { %v212_v29 = vadd.f32 %v284_v28, %v236_v27  ;;  %v206_v30 = vpop.f32.mrb[1].mxu1 }
 0x1bb   :  { %v207_v31 = vadd.f32 %v236_v27, %v206_v30 }
 0x1bc   :  { %216 = vst.msk [vmem:[#allocation2 + $0x8] sm:$0xff] %vm34_vm0, %v212_v29 }
 0x1bd   :  { %215 = vst.msk [vmem:[#allocation2] sm:$0xff] %vm34_vm0, %v207_v31 }
 0x1be   :  { %323 = shalt.err (!%p320_p4)
}
 0x1bf   :  { %s324_s25 = scalar_lea.hbm %s438_s5, 256 }
 0x1c0   :  { %p325_p5 = scmp.ne.s32.totalorder %s438_s5, %s324_s25  ;;  %p328_p6 = scmp.lt.u32.totalorder %s324_s25, %s438_s5 }
 0x1c2   :  { %p330_p7 = pnand %p328_p6, %p325_p5 }
 0x1c4   :  { %333 = shalt.err (!%p330_p7)
}
 0x1c5   :  { %s337_s30 = smov 128   ;;  %s338_s6 = smov 8  }
 0x1c6   :  { %228 = dma.vmem_to_hbm [thread:$0]  %s223_s23, 256, %s438_s5, [#allocation3], %s337_s30, %s337_s30, %s338_s6  }
 0x1c7   :  { %334 = dma.done.wait [#allocation3], 256  }
 0x1c8   :  { %335 = vsyncadd [#allocation3], 4294967040 }
 0x1c9   :  { %232 = vsyncpa [#allocation3], 1 }

</bundles_post_ra>
